<compile_context>
chip_gen: v5e
topology: v5e:2x2
jax: 0.10.0
libtpu: 0.0.40
codegen_flags: <defaults>
</compile_context>

<pallas_src>
import math

import jax
import jax.numpy as jnp
from jax.experimental import pallas as pl
from jax.experimental.pallas import tpu as pltpu


_BN_EPS = 1e-5
_LANE = 128
_SUBLANE = 8


# ----------------------------------------------------------------------------
# small host-side helpers (padding / tiling decisions)
# ----------------------------------------------------------------------------
def _round_up(x, m):
    return ((x + m - 1) // m) * m


def _pad_last(x, target):
    x = x.astype(jnp.float32)
    pad = target - x.shape[-1]
    if pad == 0:
        return x
    cfg = [(0, 0)] * (x.ndim - 1) + [(0, pad)]
    return jnp.pad(x, cfg)


def _pad_2d(w, rows, cols):
    w = w.astype(jnp.float32)
    return jnp.pad(w, ((0, rows - w.shape[0]), (0, cols - w.shape[1])))


def _vmem_sizes():
    """Generation-aware scoped-VMEM limit and tile-sizing budget."""
    try:
        cap = int(pltpu.get_tpu_info().vmem_capacity_bytes)  # 128 MiB v5e/v6e, 64 MiB v7x
    except Exception:
        cap = 64 * 1024 * 1024                               # conservative fallback
    limit = min(cap * 3 // 4, 96 * 1024 * 1024)
    budget = int(limit * 0.7)
    return int(limit), int(budget)


def _pick_tb(B, N, c_in, hp, budget):
    """Largest graphs-per-step whose *padded* VMEM working set fits the budget."""
    n_lane = _round_up(N, _LANE)
    n_sub16 = _round_up(N, 16)          # bf16 sublane packing
    n_sub8 = _round_up(N, _SUBLANE)     # f32 sublane
    c_lane = _round_up(c_in, _LANE)     # VMEM lane padding of the feature dim
    w1_res = 2 * _round_up(c_in, 16) * hp * 2   # bf16 W1, double-buffered
    best = None
    for tb in range(1, B + 1):
        if B % tb:
            continue
        tm = tb * N
        if tm % _SUBLANE != 0 and tm != B * N:   # h tile must be (8,·)-legal
            continue
        rows16 = _round_up(tm, 16)
        a_tile = tb * n_sub16 * n_lane * 2          # bf16 adjacency tile
        v_tile = tb * n_sub8 * c_lane * 4           # f32 feature tile (lane-padded)
        h_tile = rows16 * hp * 2                    # bf16 output tile
        f32_tmp = tb * n_sub8 * c_lane * 4 + rows16 * hp * 4   # agg + f32 h temporaries
        stats = 2 * 2 * _SUBLANE * hp * 4           # two (1,1,Hp) partials, 2 buffers
        per_step = 2 * (a_tile + v_tile + h_tile) + w1_res + f32_tmp + stats
        per_step = int(per_step * 1.25)             # vreg / relayout headroom
        if per_step <= budget:
            best = tb
    if best is not None:
        return best
    # Budget never fit: take the smallest legal tile (may exceed the budget on
    # pathological shapes).
    for tb in range(1, B + 1):
        if B % tb == 0 and (tb * N) % _SUBLANE == 0:
            return tb
    # TODO(synk): row-pad N to a sublane multiple (with stats correction) instead
    # of falling back to the whole problem in one tile.
    return B


def _pick_rows(M, hp, op, budget):
    """Row tile for the per-row stages 2/3 (independent of the graph tiling)."""
    per_row = 2 * (hp * 2 + op * 2) + (hp + op) * 4   # dbl-buffered bf16 i/o + f32 temps
    cap = min(M, 2048, max(_SUBLANE, budget // max(per_row, 1)))
    best = None
    d = _SUBLANE
    while d <= cap:
        if M % d == 0:
            best = d
        d += _SUBLANE
    return best if best is not None else M


# ----------------------------------------------------------------------------
# Stage 1: fused GIN aggregation + Linear1, per-step BN1 partial sum / sum-sq.
#   grid step i handles TB graphs: agg = a[b] @ v[b] + eps * v[b], h = agg @ W1
# ----------------------------------------------------------------------------
def _stage1_kernel(eps_ref, a_ref, v_ref, w1_ref, h_ref, psum_ref, psq_ref):
    v = v_ref[...]                                           # (TB, N, C) f32
    # bf16 MXU inputs, f32 accumulation.  adjacency is 0/1 -> bf16 exact.
    # TODO(synk): for tiny N, block-diagonal packing of several graphs per MXU
    # call (or a VPU aggregation) would raise MXU utilisation further.
    agg = jnp.einsum("bij,bjc->bic", a_ref[...], v.astype(jnp.bfloat16),
                     preferred_element_type=jnp.float32)
    agg = agg + eps_ref[0, 0] * v                            # f32
    x = agg.reshape(-1, agg.shape[-1]).astype(jnp.bfloat16)  # (TB*N, C) '(b n) c'
    # Linear1 (bias folded into BatchNorm's mean subtraction)
    h = jnp.dot(x, w1_ref[...], preferred_element_type=jnp.float32)
    h_ref[...] = h.astype(h_ref.dtype)
    psum_ref[...] = jnp.sum(h, axis=0).reshape(1, 1, -1)
    psq_ref[...] = jnp.sum(h * h, axis=0).reshape(1, 1, -1)


def _gin_linear1(eps, a_bf16, v_f32, w1_bf16, *, tb, vmem_limit):
    B, N, c_in = v_f32.shape
    hp = w1_bf16.shape[1]
    M = B * N
    tm = tb * N
    steps = B // tb
    flops = 2 * B * N * N * c_in + 2 * M * c_in * hp
    bytes_accessed = (a_bf16.size * 2 + v_f32.size * 4 + w1_bf16.size * 2
                      + M * hp * 2 + steps * hp * 8)
    return pl.pallas_call(
        _stage1_kernel,
        out_shape=(jax.ShapeDtypeStruct((M, hp), jnp.bfloat16),
                   jax.ShapeDtypeStruct((steps, 1, hp), jnp.float32),
                   jax.ShapeDtypeStruct((steps, 1, hp), jnp.float32)),
        grid=(steps,),
        in_specs=[
            pl.BlockSpec(memory_space=pltpu.MemorySpace.SMEM),   # epsilon (1,1)
            pl.BlockSpec((tb, N, N), lambda i: (i, 0, 0)),       # adjacency (bf16)
            pl.BlockSpec((tb, N, c_in), lambda i: (i, 0, 0)),    # features (f32, no lane pad)
            pl.BlockSpec((c_in, hp), lambda i: (0, 0)),          # W1 (bf16, resident)
        ],
        out_specs=(
            pl.BlockSpec((tm, hp), lambda i: (i, 0)),            # h tile (lane-dense, bf16)
            pl.BlockSpec((1, 1, hp), lambda i: (i, 0, 0)),       # per-step partial sum
            pl.BlockSpec((1, 1, hp), lambda i: (i, 0, 0)),       # per-step partial sum-sq
        ),
        compiler_params=pltpu.CompilerParams(
            dimension_semantics=("parallel",),                   # no carried state
            vmem_limit_bytes=vmem_limit),
        cost_estimate=pl.CostEstimate(flops=int(flops), transcendentals=0,
                                      bytes_accessed=int(bytes_accessed)),
    )(eps, a_bf16, v_f32, w1_bf16)


# ----------------------------------------------------------------------------
# Stage 2: BN1 apply (single FMA) + ReLU + Linear2, per-step BN2 partial stats.
# ----------------------------------------------------------------------------
def _stage2_kernel(h_ref, scale1_ref, shift1_ref, w2_ref, z_ref, psum_ref, psq_ref):
    h = h_ref[...].astype(jnp.float32)
    hr = jnp.maximum(h * scale1_ref[...] + shift1_ref[...], 0.0)
    z = jnp.dot(hr.astype(jnp.bfloat16), w2_ref[...],
                preferred_element_type=jnp.float32)
    z_ref[...] = z.astype(z_ref.dtype)
    psum_ref[...] = jnp.sum(z, axis=0).reshape(1, 1, -1)
    psq_ref[...] = jnp.sum(z * z, axis=0).reshape(1, 1, -1)


def _bn_relu_linear2(h, scale1, shift1, w2_bf16, *, tm, vmem_limit):
    M, hp = h.shape
    op = w2_bf16.shape[1]
    steps = M // tm
    flops = 2 * M * hp * op + 4 * M * hp + 3 * M * op
    bytes_accessed = (M * hp * 2 + hp * op * 2 + M * op * 2
                      + 2 * hp * 4 + steps * op * 8)
    return pl.pallas_call(
        _stage2_kernel,
        out_shape=(jax.ShapeDtypeStruct((M, op), jnp.bfloat16),
                   jax.ShapeDtypeStruct((steps, 1, op), jnp.float32),
                   jax.ShapeDtypeStruct((steps, 1, op), jnp.float32)),
        grid=(steps,),
        in_specs=[
            pl.BlockSpec((tm, hp), lambda i: (i, 0)),
            pl.BlockSpec((1, hp), lambda i: (0, 0)),    # fused BN1 scale
            pl.BlockSpec((1, hp), lambda i: (0, 0)),    # fused BN1 shift
            pl.BlockSpec((hp, op), lambda i: (0, 0)),   # W2 (bf16, resident)
        ],
        out_specs=(
            pl.BlockSpec((tm, op), lambda i: (i, 0)),
            pl.BlockSpec((1, 1, op), lambda i: (i, 0, 0)),
            pl.BlockSpec((1, 1, op), lambda i: (i, 0, 0)),
        ),
        compiler_params=pltpu.CompilerParams(
            dimension_semantics=("parallel",),
            vmem_limit_bytes=vmem_limit),
        cost_estimate=pl.CostEstimate(flops=int(flops), transcendentals=0,
                                      bytes_accessed=int(bytes_accessed)),
    )(h, scale1, shift1, w2_bf16)


# ----------------------------------------------------------------------------
# Stage 3: BN2 apply (single FMA) + ReLU (pure elementwise -> parallel grid).
# ----------------------------------------------------------------------------
def _stage3_kernel(z_ref, scale2_ref, shift2_ref, o_ref):
    z = z_ref[...].astype(jnp.float32)
    o_ref[...] = jnp.maximum(z * scale2_ref[...] + shift2_ref[...], 0.0)


def _bn_relu_out(z, scale2, shift2, *, tm, vmem_limit):
    M, op = z.shape
    return pl.pallas_call(
        _stage3_kernel,
        out_shape=jax.ShapeDtypeStruct((M, op), jnp.float32),
        grid=(M // tm,),
        in_specs=[
            pl.BlockSpec((tm, op), lambda i: (i, 0)),
            pl.BlockSpec((1, op), lambda i: (0, 0)),
            pl.BlockSpec((1, op), lambda i: (0, 0)),
        ],
        out_specs=pl.BlockSpec((tm, op), lambda i: (i, 0)),
        compiler_params=pltpu.CompilerParams(
            dimension_semantics=("parallel",),
            vmem_limit_bytes=vmem_limit),
        cost_estimate=pl.CostEstimate(flops=int(3 * M * op), transcendentals=0,
                                      bytes_accessed=int(M * op * 6)),
    )(z, scale2, shift2)


def _bn_scale_shift(psum, psq, gamma, beta, num_rows):
    """Reduce per-step partials and fold BN into one scale/shift FMA."""
    s = jnp.sum(psum, axis=0)                     # (1, C)
    ss = jnp.sum(psq, axis=0)                     # (1, C)
    mean = s / num_rows
    # TODO(synk): E[x^2]-E[x]^2 in f32 can cancel for very large batches /
    # large pre-BN magnitudes; switch to per-tile Welford merging in that regime.
    var = jnp.maximum(ss / num_rows - mean * mean, 0.0)
    rstd = jax.lax.rsqrt(var + _BN_EPS)
    scale = rstd * gamma
    shift = beta - mean * scale
    return scale, shift


# ----------------------------------------------------------------------------
# Full module forward
# ----------------------------------------------------------------------------
def layer_gin_mlp_forward(v, a, params, *, tb=None):
    B, N, c_in = v.shape
    H = params["w1"].shape[1]
    O = params["w2"].shape[1]
    M = B * N
    hp = _round_up(H, _LANE)     # lane-dense output dims only
    op = _round_up(O, _LANE)

    vmem_limit, vmem_budget = _vmem_sizes()

    # bf16 MXU operands (adjacency 0/1 -> exact in bf16); BN params stay f32.
    v_f32 = v.astype(jnp.float32)
    a_bf16 = a.astype(jnp.bfloat16)
    w1_bf16 = _pad_2d(params["w1"], c_in, hp).astype(jnp.bfloat16)
    w2_bf16 = _pad_2d(params["w2"], hp, op).astype(jnp.bfloat16)
    g1 = _pad_last(params["g1"].reshape(1, -1), hp)
    be1 = _pad_last(params["be1"].reshape(1, -1), hp)
    g2 = _pad_last(params["g2"].reshape(1, -1), op)
    be2 = _pad_last(params["be2"].reshape(1, -1), op)
    eps = jnp.asarray(params["epsilon"], jnp.float32).reshape(1, 1)
    # NOTE: Linear biases b1/b2 are a no-op before train-mode BatchNorm
    # (mean subtraction cancels them), so they are not passed to the kernels.

    if tb is None:
        tb = _pick_tb(B, N, c_in, hp, vmem_budget)
    assert B % tb == 0, "tb must divide the batch size"
    assert (tb * N) % _SUBLANE == 0 or tb * N == M, "h tile must be sublane-aligned"

    h, ps1, psq1 = _gin_linear1(eps, a_bf16, v_f32, w1_bf16, tb=tb,
                                vmem_limit=vmem_limit)
    scale1, shift1 = _bn_scale_shift(ps1, psq1, g1, be1, M)

    tm = _pick_rows(M, hp, op, vmem_budget)      # decoupled from the graph tiling
    z, ps2, psq2 = _bn_relu_linear2(h, scale1, shift1, w2_bf16, tm=tm,
                                    vmem_limit=vmem_limit)
    scale2, shift2 = _bn_scale_shift(ps2, psq2, g2, be2, M)

    y = _bn_relu_out(z, scale2, shift2, tm=tm, vmem_limit=vmem_limit)
    return y[:, :O].reshape(B, N, O)


# ----------------------------------------------------------------------------
# Pure-JAX f32 reference (PyTorch train-mode semantics) for correctness checks.
# ----------------------------------------------------------------------------
def reference_forward(v, a, params):
    v_agg = jnp.einsum("bij,bjc->bic", a, v) + params["epsilon"] * v
    x = v_agg.reshape(-1, v.shape[-1])

    h = x @ params["w1"] + params["b1"]
    m, var = jnp.mean(h, 0, keepdims=True), jnp.var(h, 0, keepdims=True)
    h = (h - m) / jnp.sqrt(var + _BN_EPS) * params["g1"] + params["be1"]
    h = jnp.maximum(h, 0.0)

    z = h @ params["w2"] + params["b2"]
    m2, var2 = jnp.mean(z, 0, keepdims=True), jnp.var(z, 0, keepdims=True)
    z = (z - m2) / jnp.sqrt(var2 + _BN_EPS) * params["g2"] + params["be2"]
    z = jnp.maximum(z, 0.0)
    return z.reshape(v.shape[0], v.shape[1], -1)


def init_params(key, input_dim, hidden_dim, output_dim):
    """Deterministic PyTorch-style init (Linear: U(-1/sqrt(fan_in), 1/sqrt(fan_in)))."""
    k1, k2, k3, k4 = jax.random.split(key, 4)
    lim1 = 1.0 / math.sqrt(input_dim)
    lim2 = 1.0 / math.sqrt(hidden_dim)
    return {
        "epsilon": jnp.zeros((1, 1), jnp.float32),    # nn.Parameter([[0.0]])
        "w1": jax.random.uniform(k1, (input_dim, hidden_dim), jnp.float32, -lim1, lim1),
        "b1": jax.random.uniform(k2, (1, hidden_dim), jnp.float32, -lim1, lim1),
        "g1": jnp.ones((1, hidden_dim), jnp.float32),
        "be1": jnp.zeros((1, hidden_dim), jnp.float32),
        "w2": jax.random.uniform(k3, (hidden_dim, output_dim), jnp.float32, -lim2, lim2),
        "b2": jax.random.uniform(k4, (1, output_dim), jnp.float32, -lim2, lim2),
        "g2": jnp.ones((1, output_dim), jnp.float32),
        "be2": jnp.zeros((1, output_dim), jnp.float32),
    }


if __name__ == "__main__":
    B, N = 8, 16
    INPUT_DIM, HIDDEN_DIM, OUTPUT_DIM = 8, 32, 16

    key = jax.random.PRNGKey(0)
    kv, ka, kp = jax.random.split(key, 3)

    v = jax.random.normal(kv, (B, N, INPUT_DIM), jnp.float32)
    # Simple symmetric 0/1 adjacency (deterministic).
    a_raw = jax.random.uniform(ka, (B, N, N), jnp.float32)
    a = (a_raw + jnp.swapaxes(a_raw, 1, 2) > 1.0).astype(jnp.float32)

    params = init_params(kp, INPUT_DIM, HIDDEN_DIM, OUTPUT_DIM)
    # use a non-zero epsilon so the eps*v path is actually exercised
    params["epsilon"] = jnp.full((1, 1), 0.1, jnp.float32)

    # tb=2 -> 4 stage-1 grid steps: exercises the multi-step partial-stats path
    out = layer_gin_mlp_forward(v, a, params, tb=2)
    out = jax.block_until_ready(out)

    ref = reference_forward(v, a, params)
    assert out.shape == (B, N, OUTPUT_DIM)
    max_err = float(jnp.max(jnp.abs(out - ref)))
    # Matmuls run with bf16 operands (f32 accumulation), so tolerance is looser
    # than a pure-f32 pipeline.
    assert jnp.allclose(out, ref, atol=5e-2, rtol=5e-2), \
        f"mismatch vs reference (max |err|={max_err})"

    print("KERNEL_OK")
</pallas_src>

<mosaic_0001>
module attributes {stable_mosaic.version = 11 : i64} {
  func.func @_stage1_kernel(%arg0: i32, %arg1: memref<1x1xf32, #tpu.memory_space<smem>>, %arg2: memref<2x16x16xbf16, #tpu.memory_space<vmem>>, %arg3: memref<2x16x8xf32, #tpu.memory_space<vmem>>, %arg4: memref<8x128xbf16, #tpu.memory_space<vmem>>, %arg5: memref<32x128xbf16, #tpu.memory_space<vmem>>, %arg6: memref<1x1x128xf32, #tpu.memory_space<vmem>>, %arg7: memref<1x1x128xf32, #tpu.memory_space<vmem>>) attributes {dimension_semantics = [#tpu.dimension_semantics<parallel>], iteration_bounds = array<i64: 4>, scalar_prefetch = 0 : i64, scratch_operands = 0 : i64, tpu.core_type = #tpu.core_type<tc>, window_params = [{transform_indices = @transform_0, window_bounds = array<i64: 1, 1>}, {transform_indices = @transform_1, window_bounds = array<i64: 2, 16, 16>}, {transform_indices = @transform_2, window_bounds = array<i64: 2, 16, 8>}, {pipeline_mode = #tpu.pipeline_mode<synchronous>, transform_indices = @transform_3, window_bounds = array<i64: 8, 128>}, {transform_indices = @transform_4, window_bounds = array<i64: 32, 128>}, {transform_indices = @transform_5, window_bounds = array<i64: 1, 1, 128>}, {transform_indices = @transform_6, window_bounds = array<i64: 1, 1, 128>}]} {
    %c0 = arith.constant 0 : index
    %c0_0 = arith.constant 0 : index
    %c0_1 = arith.constant 0 : index
    %0 = vector.load %arg3[%c0, %c0_0, %c0_1] : memref<2x16x8xf32, #tpu.memory_space<vmem>>, vector<2x16x8xf32>
    %c0_2 = arith.constant 0 : index
    %c0_3 = arith.constant 0 : index
    %c0_4 = arith.constant 0 : index
    %1 = vector.load %arg2[%c0_2, %c0_3, %c0_4] : memref<2x16x16xbf16, #tpu.memory_space<vmem>>, vector<2x16x16xbf16>
    %2 = arith.truncf %0 : vector<2x16x8xf32> to vector<2x16x8xbf16>
    "tpu.trace_start"() <{level = 10 : i32, message = "bij,bjc->bic"}> : () -> ()
    %cst = arith.constant dense<0.000000e+00> : vector<2x16x8xf32>
    %3 = tpu.matmul %1, %2, %cst {dimension_numbers = #tpu.dot_dimension_numbers<[2], [1], [1], [2], [0, 0, 0, 1, 1, 2], [0], [0]>} : vector<2x16x16xbf16>, vector<2x16x8xbf16>, vector<2x16x8xf32> -> vector<2x16x8xf32>
    "tpu.trace_stop"() : () -> ()
    %c0_5 = arith.constant 0 : index
    %c0_6 = arith.constant 0 : index
    %4 = memref.load %arg1[%c0_5, %c0_6] : memref<1x1xf32, #tpu.memory_space<smem>>
    %5 = vector.broadcast %4 : f32 to vector<2x16x8xf32>
    %6 = arith.mulf %5, %0 : vector<2x16x8xf32>
    %7 = arith.addf %3, %6 : vector<2x16x8xf32>
    %8 = vector.shape_cast %7 : vector<2x16x8xf32> to vector<32x8xf32>
    %9 = arith.truncf %8 : vector<32x8xf32> to vector<32x8xbf16>
    %c0_7 = arith.constant 0 : index
    %c0_8 = arith.constant 0 : index
    %10 = vector.load %arg4[%c0_7, %c0_8] : memref<8x128xbf16, #tpu.memory_space<vmem>>, vector<8x128xbf16>
    %cst_9 = arith.constant dense<0.000000e+00> : vector<32x128xf32>
    %11 = tpu.matmul %9, %10, %cst_9 {dimension_numbers = #tpu.dot_dimension_numbers<[1], [0], [0], [1], [0, 0, 1, 1], [], []>} : vector<32x8xbf16>, vector<8x128xbf16>, vector<32x128xf32> -> vector<32x128xf32>
    %12 = arith.truncf %11 : vector<32x128xf32> to vector<32x128xbf16>
    %c0_10 = arith.constant 0 : index
    %c0_11 = arith.constant 0 : index
    %13 = vector.load %arg5[%c0_10, %c0_11] : memref<32x128xbf16, #tpu.memory_space<vmem>>, vector<32x128xbf16>
    tpu.vector_store %arg5[%c0_10, %c0_11], %12 {strides = array<i32>} : memref<32x128xbf16, #tpu.memory_space<vmem>>, vector<32x128xbf16>,
    %cst_12 = arith.constant dense<0.000000e+00> : vector<128xf32>
    %14 = vector.multi_reduction <add>, %11, %cst_12 [0] : vector<32x128xf32> to vector<128xf32>
    %15 = vector.shape_cast %14 : vector<128xf32> to vector<1x1x128xf32>
    %c0_13 = arith.constant 0 : index
    %c0_14 = arith.constant 0 : index
    %c0_15 = arith.constant 0 : index
    %16 = vector.load %arg6[%c0_13, %c0_14, %c0_15] : memref<1x1x128xf32, #tpu.memory_space<vmem>>, vector<1x1x128xf32>
    tpu.vector_store %arg6[%c0_13, %c0_14, %c0_15], %15 {strides = array<i32>} : memref<1x1x128xf32, #tpu.memory_space<vmem>>, vector<1x1x128xf32>,
    %17 = arith.mulf %11, %11 : vector<32x128xf32>
    %cst_16 = arith.constant dense<0.000000e+00> : vector<128xf32>
    %18 = vector.multi_reduction <add>, %17, %cst_16 [0] : vector<32x128xf32> to vector<128xf32>
    %19 = vector.shape_cast %18 : vector<128xf32> to vector<1x1x128xf32>
    %c0_17 = arith.constant 0 : index
    %c0_18 = arith.constant 0 : index
    %c0_19 = arith.constant 0 : index
    %20 = vector.load %arg7[%c0_17, %c0_18, %c0_19] : memref<1x1x128xf32, #tpu.memory_space<vmem>>, vector<1x1x128xf32>
    tpu.vector_store %arg7[%c0_17, %c0_18, %c0_19], %19 {strides = array<i32>} : memref<1x1x128xf32, #tpu.memory_space<vmem>>, vector<1x1x128xf32>,
    return
  }
  func.func @transform_0(%arg0: i32) -> (i32, i32) {
    %c0_i32 = arith.constant 0 : i32
    %c0_i32_0 = arith.constant 0 : i32
    %c0_i32_1 = arith.constant 0 : i32
    return %c0_i32, %c0_i32_0 : i32, i32
  }
  func.func @transform_1(%arg0: i32) -> (i32, i32, i32) {
    %c0_i32 = arith.constant 0 : i32
    %c0_i32_0 = arith.constant 0 : i32
    %c0_i32_1 = arith.constant 0 : i32
    return %arg0, %c0_i32, %c0_i32_0 : i32, i32, i32
  }
  func.func @transform_2(%arg0: i32) -> (i32, i32, i32) {
    %c0_i32 = arith.constant 0 : i32
    %c0_i32_0 = arith.constant 0 : i32
    %c0_i32_1 = arith.constant 0 : i32
    return %arg0, %c0_i32, %c0_i32_0 : i32, i32, i32
  }
  func.func @transform_3(%arg0: i32) -> (i32, i32) {
    %c0_i32 = arith.constant 0 : i32
    %c0_i32_0 = arith.constant 0 : i32
    %c0_i32_1 = arith.constant 0 : i32
    return %c0_i32, %c0_i32_0 : i32, i32
  }
  func.func @transform_4(%arg0: i32) -> (i32, i32) {
    %c0_i32 = arith.constant 0 : i32
    %c0_i32_0 = arith.constant 0 : i32
    return %arg0, %c0_i32 : i32, i32
  }
  func.func @transform_5(%arg0: i32) -> (i32, i32, i32) {
    %c0_i32 = arith.constant 0 : i32
    %c0_i32_0 = arith.constant 0 : i32
    %c0_i32_1 = arith.constant 0 : i32
    return %arg0, %c0_i32, %c0_i32_0 : i32, i32, i32
  }
  func.func @transform_6(%arg0: i32) -> (i32, i32, i32) {
    %c0_i32 = arith.constant 0 : i32
    %c0_i32_0 = arith.constant 0 : i32
    %c0_i32_1 = arith.constant 0 : i32
    return %arg0, %c0_i32, %c0_i32_0 : i32, i32, i32
  }
}

</mosaic_0001>

<bundles_post_ra>
// kernel: tpu_custom_call.1
= control target key start
LH: loop header
LB: loop body
LE: loop exit
PB: predicated region body
PF: predicated region fallthrough
CT: control target
= control target key end

     0   :  { %s1026_s0 = inlined_call_operand.<no memory space> [shape: f32[1,1], index: 0, kind: input, shape index: {}]   ;;  %s1027_s1 = inlined_call_operand.vmem [shape: bf16[8,16,16], index: 1, kind: input, shape index: {}]   ;;  %s1028_s2 = inlined_call_operand.vmem [shape: f32[8,16,8], index: 2, kind: input, shape index: {}]   ;;  %s1029_s3 = inlined_call_operand.vmem [shape: bf16[8,128], index: 3, kind: input, shape index: {}]   ;;  %s1030_s4 = inlined_call_operand.hbm [shape: bf16[128,128], index: 4, kind: output, shape index: {0}]   ;;  %s1031_s5 = inlined_call_operand.hbm [shape: f32[4,1,128], index: 5, kind: output, shape index: {1}]   ;;  %s1032_s6 = inlined_call_operand.hbm [shape: f32[4,1,128], index: 6, kind: output, shape index: {2}]  }
   0x1   :  { %12 = sst [smem:[#allocation2]] %s1026_s0 }
   0x2   :  { %13 = vsyncpa [#allocation4], 0 }
   0x3   :  { %15 = vsyncpa [#allocation4 + $0x1], 0 }
   0x4   :  { %16 = vsyncpa [#allocation6], 0 }
   0x5   :  { %18 = vsyncpa [#allocation6 + $0x1], 0  ;;  %s876_s23 = smov 0   ;;  %s878_s24 = smov 0  }
   0x6   :  { %s880_s25 = smov 0   ;;  %s882_s26 = smov 0  }
   0x7 LB: > { %s897_s0 = sadd.s32 4294967295, %s834_s26   ;;  %s616_s27 = sadd.s32 4294967294, %s834_s26   ;;  %s834_s26 = sphi %s882_s26, %s1038_s26   ;;  %s830_s25 = sphi %s880_s25, %s1037_s25   ;;  %s826_s24 = sphi %s878_s24, %s1036_s24   ;;  %s822_s23 = sphi %s876_s23, %s1035_s23  }
   0x8   : > { %s901_s28 = sadd.s32 1, %s834_s26   ;;  %s125_s29 = sadd.s32 1, %s830_s25 }
   0x9   : > { %s122_s30 = ssub.s32 %s834_s26, %s901_s28  ;;  %p135_p0 = scmp.ne.s32.totalorder %s830_s25, %s826_s24 }
   0xa   : > { %p123_p1 = scmp.eq.s32.totalorder %s122_s30, 0  ;;  %p136_p2 = scmp.eq.s32.totalorder %s897_s0, 3 }
   0xb   : > { %p141_p3 = scmp.ne.s32.totalorder %s826_s24, %s822_s23  ;;  %p142_p4 = scmp.eq.s32.totalorder %s616_s27, 3 }
   0xc   : > { %s914_s7 = scalar_select %p123_p1, %s830_s25, %s125_s29  }
   0xd   : > { %p916_p5 = por %p136_p2, %p135_p0  ;;  %p920_p6 = por %p142_p4, %p141_p3 }
   0xe   : > { %p619_p7 = scmp.ge.s32.totalorder %s834_s26, 1  ;;  %p238_p8 = scmp.lt.s32.totalorder %s834_s26, 5 }
  0x10   : > { %p239_p9 = pnand %p619_p7, %p238_p8 }
  0x11   : > { %s621_s10 = sshll.u32 (!%p239_p9), %s897_s0, 1  ;;  %s311_s21 = sld [smem:[#allocation2]] (!%p239_p9) }
  0x12   : > { %242 = sbr.rel (%p239_p9) target bundleno = 351 (0x15f), region = 36  ;;  %p284_p10 = scmp.lt.s32.totalorder (!%p239_p9), %s621_s10, 7 }
  0x13   : > { %s937_s22 = sand.u32 (!%p239_p9), 1, %s826_s24   ;;  %s648_s30 = sshll.u32 (!%p239_p9), %s897_s0, 4 }
  0x14   : > { %s620_s29 = sshll.u32 (!%p239_p9), %s937_s22, 4  ;;  %s459_s12 = scalar_lea.hbm (!%p239_p9), %s1030_s4, %s648_s30 }
  0x15   : > { %s270_s13 = scalar_lea.vmem (!%p239_p9), [#allocation3], %s620_s29  ;;  %s440_s16 = scalar_lea.sflag (!%p239_p9), [#allocation4], %s937_s22 }
  0x17   : > { %s1040_s10 = smov (!%p284_p10, %s621_s10), 7  ;;  %vm328_vm0 = vcmask 130048   ;;  %v376_v16 = vld [vmem:[%s1029_s3] sm:$0xf]  ;;  %vm384_vm1 = vcmask 1043456   ;;  %v312_v20 = vstv %s311_s21  ;;  %vm377_vm2 = vcmask 64512  }
  0x18   : > { %s645_s11 = sshll.u32 %s1040_s10, 4  ;;  %s644_s15 = sshll.u32 %s1040_s10, 3  ;;  %v386_v17 = vsel %vm384_vm1, %v376_v16, 0 }
  0x19   : > { %s295_s14 = scalar_lea.vmem %s1028_s2, %s645_s11  ;;  %s288_s18 = scalar_lea.vmem %s1027_s1, %s644_s15  ;;  %395 = vmatpush.bf16.msra.mxu2 %v386_v17  ;;  %660 = vmatpush.bf16.msra.mxu3 %v386_v17 }
  0x1a   : > { %v299_v0 = vld [vmem:[%s295_s14] sm:$0xff]  ;;  %v300_v1 = vld [vmem:[%s295_s14 + $0x8] sm:$0xff]  ;;  %v301_v2 = vld [vmem:[%s295_s14 + $0x10] sm:$0xff]  ;;  %s462_s15 = sshll.u32 %s459_s12, 4  ;;  %s732_s21 = scalar_lea.hbm %s1030_s4, 64  ;;  %s463_s15 = int_to_ptr.hbm [resolvable:$true] %s462_s15 }
  0x1b   : > { %v307_v3 = vpack.c.bf16 %v299_v0, %v299_v0  ;;  %v308_v4 = vpack.c.bf16 %v300_v1, %v300_v1  ;;  %v302_v5 = vld [vmem:[%s295_s14 + $0x18] sm:$0xff]  ;;  %v309_v6 = vpack.c.bf16 %v301_v2, %v301_v2  ;;  %v646_v14 = vld [vmem:[%s288_s18] sm:$0xff]  ;;  %v647_v15 = vld [vmem:[%s288_s18 + $0x8] sm:$0xff]  ;;  %v313_v21 = vmul.f32 %v312_v20, %v299_v0  ;;  %s460_s14 = sshll.u32 %s270_s13, 4  ;;  %s726_s17 = sshra.s32 %s463_s15, 4  ;;  %s944_s14 = int_to_ptr.vmem [resolvable:$true] %s460_s14  ;;  %s727_s17 = int_to_ptr.hbm [resolvable:$true] %s726_s17 }
  0x1c   : > { %v310_v7 = vpack.c.bf16 %v302_v5, %v302_v5  ;;  %v314_v22 = vmul.f32 %v312_v20, %v300_v1  ;;  %v315_v23 = vmul.f32 %v312_v20, %v301_v2  ;;  %v316_v24 = vmul.f32 %v312_v20, %v302_v5  ;;  %s728_s18 = scalar_lea.hbm %s727_s17, 16  ;;  %p733_p0 = scmp.lt.s32.totalorder %s727_s17, %s1030_s4 }
  0x1d   : > { %v324_v8 = vunpack.c.l.b16 %v307_v3  ;;  %v325_v9 = vunpack.c.l.b16 %v308_v4  ;;  %v353_v10 = vunpack.c.l.b16 %v309_v6  ;;  %p729_p11 = scmp.ne.s32.totalorder %s727_s17, %s728_s18  ;;  %p734_p1 = scmp.lt.s32.totalorder %s732_s21, %s728_s18 }
  0x1e   : > { %v354_v11 = vunpack.c.l.b16 %v310_v7 }
  0x1f   : > { %v326_v12 = vpack.c.b16 %v325_v9, %v324_v8  ;;  %p730_p12 = pnand %p729_p11, %p916_p5  ;;  %p735_p2 = por %p734_p1, %p733_p0 }
  0x20   : > { %v355_v13 = vpack.c.b16 %v354_v11, %v353_v10 }
  0x21   : > { %339 = vmatpush.bf16.msra.mxu0 %v326_v12  ;;  %p731_p13 = pneg %p730_p12 }
  0x22   : > { %367 = vmatpush.bf16.msra.mxu1 %v355_v13 }
  0x23   : > { %p736_p3 = pnand %p735_p2, %p731_p13 }
  0x24   : > { %631 = vmatmul.msk.bf16.vlgmr.msra.gmra.mxu0 %vm328_vm0, %v646_v14 }
  0x25   : > { %636 = vmatmul.msk.bf16.vlgmr.msra.gmra.mxu1 %vm328_vm0, %v647_v15 }
  0xa1   : > { %v341_v18 = vpop.f32.mrf.mxu0 }
  0xa2   : > { %v369_v19 = vpop.f32.mrf.mxu1  ;;  %v342_v26 = vadd.f32 %v341_v18, %v313_v21 }
  0xa3   : > { %v370_v29 = vadd.f32 %v369_v19, %v315_v23 }
  0xa9   : > { %v343_v25 = vpop.f32.mrf.mxu0 }
  0xaa   : > { %v344_v27 = vadd.f32 %v343_v25, %v314_v22  ;;  %v371_v28 = vpop.f32.mrf.mxu1 }
  0xab   : > { %v372_v30 = vadd.f32 %v371_v28, %v316_v24 }
  0xac   : > { %v374_v31 = vpack.c.bf16 %v344_v27, %v342_v26 }
  0xad   : > { %v375_v32 = vpack.c.bf16 %v372_v30, %v370_v29 }
  0xae   : > { %637 = vmatmul.msk.bf16.vlgmr.msra.gmra.mxu2 %vm377_vm2, %v374_v31 }
  0xaf   : > { %638 = vmatmul.msk.bf16.vlgmr.msra.gmra.mxu3 %vm377_vm2, %v375_v32 }
 0x131   : > { %v397_v33 = vpop.f32.mrf.mxu2 }
 0x132   : > { %v402_v34 = vpop.f32.mrf.mxu3  ;;  %v425_v36 = vmul.f32 %v397_v33, %v397_v33 }
 0x133   : > { %v427_v42 = vmul.f32 %v402_v34, %v402_v34 }
 0x139   : > { %v399_v35 = vpop.f32.mrf.mxu2 }
 0x13a   : > { %v652_v37 = vpack.c.bf16 %v399_v35, %v397_v33  ;;  %v415_v38 = vadd.f32 %v399_v35, %v397_v33  ;;  %v426_v39 = vmul.f32 %v399_v35, %v399_v35  ;;  %v404_v40 = vpop.f32.mrf.mxu3 }
 0x13b   : > { %v657_v41 = vpack.c.bf16 %v404_v40, %v402_v34  ;;  %v428_v46 = vmul.f32 %v404_v40, %v404_v40 }
 0x13c   : > { %653 = vst [vmem:[%s270_s13] sm:$0xff] %v652_v37   ;;  %v429_v43 = vadd.f32 %v426_v39, %v425_v36  ;;  %v416_v44 = vadd.f32 %v415_v38, %v402_v34 }
 0x13d   : > { %659 = vst [vmem:[%s270_s13 + $0x8] sm:$0xff] %v657_v41  }
 0x13e   : > { %v417_v45 = vadd.f32 %v416_v44, %v404_v40  ;;  %v430_v47 = vadd.f32 %v429_v43, %v427_v42 }
 0x13f   : > { %739 = shalt.err (!%p736_p3)
}
 0x140   : > { %s836_s10 = smov 64   ;;  %s837_s11 = smov 4   ;;  %v418_v48 = vrot.slane %v417_v45, 4  ;;  %v431_v49 = vadd.f32 %v430_v47, %v428_v46 }
 0x141   : > { %661 = dma.vmem_to_hbm [thread:$0]  (%p916_p5), %s944_s14, 256, %s463_s15, %s440_s16, %s836_s10, %s836_s10, %s837_s11  }
 0x142   : > { %v419_v50 = vadd.f32 %v418_v48, %v417_v45  ;;  %v432_v51 = vrot.slane %v431_v49, 4  ;;  %s474_s17 = scalar_lea.hbm %s1031_s5, %s897_s0  ;;  %s444_s18 = sand.u32 1, %s897_s0  }
 0x143   : > { %s487_s21 = scalar_lea.hbm %s1032_s6, %s897_s0  ;;  %s276_s29 = scalar_lea.vmem [#allocation5], %s937_s22 }
 0x144   : > { %v420_v52 = vrot.slane %v419_v50, 2  ;;  %v433_v53 = vadd.f32 %v432_v51, %v431_v49  ;;  %s968_s14 = sshll.u32 %s276_s29, 4  ;;  %s970_s15 = sshll.u32 %s474_s17, 4  ;;  %s477_s14 = int_to_ptr.vmem [resolvable:$true] %s968_s14  ;;  %s479_s15 = int_to_ptr.hbm [resolvable:$true] %s970_s15 }
 0x145   : > { %s282_s16 = scalar_lea.vmem [#allocation7], %s937_s22  ;;  %s975_s10 = sshll.u32 %s487_s21, 4  ;;  %s492_s10 = int_to_ptr.hbm [resolvable:$true] %s975_s10 }
 0x146   : > { %v421_v54 = vadd.f32 %v420_v52, %v419_v50  ;;  %v434_v55 = vrot.slane %v433_v53, 2  ;;  %s973_s30 = sshll.u32 %s282_s16, 4  ;;  %s445_s0 = scalar_lea.sflag [#allocation6], %s444_s18  ;;  %s490_s30 = int_to_ptr.vmem [resolvable:$true] %s973_s30 }
 0x147   : > { %s754_s11 = sshra.s32 %s479_s15, 4  ;;  %s760_s17 = scalar_lea.hbm %s1031_s5, 4  ;;  %s755_s11 = int_to_ptr.hbm [resolvable:$true] %s754_s11 }
 0x148   : > { %v435_v56 = vadd.f32 %v434_v55, %v433_v53  ;;  %v422_v57 = vrot.slane %v421_v54, 1  ;;  %s756_s12 = scalar_lea.hbm %s755_s11, 1  ;;  %p761_p9 = scmp.lt.s32.totalorder %s755_s11, %s1031_s5 }
 0x149   : > { %p757_p4 = scmp.ne.s32.totalorder %s755_s11, %s756_s12  ;;  %p762_p10 = scmp.lt.s32.totalorder %s760_s17, %s756_s12 }
 0x14a   : > { %v423_v58 = vadd.f32 %v422_v57, %v421_v54  ;;  %v436_v59 = vrot.slane %v435_v56, 1 }
 0x14b   : > { %p758_p7 = pnand %p757_p4, %p916_p5  ;;  %p763_p11 = por %p762_p10, %p761_p9 }
 0x14c   : > { %424 = vst [vmem:[%s276_s29] sm:$0x1] %v423_v58  ;;  %v437_v60 = vadd.f32 %v436_v59, %v435_v56 }
 0x14d   : > { %p759_p8 = pneg %p758_p7 }
 0x14f   : > { %p764_p12 = pnand %p763_p11, %p759_p8 }
 0x151   : > { %767 = shalt.err (!%p764_p12)
}
 0x152   : > { %662 = dma.vmem_to_hbm [thread:$0]  (%p916_p5), %s477_s14, 16, %s479_s15, %s445_s0   ;;  %438 = vst [vmem:[%s282_s16] sm:$0x1] %v437_v60 }
 0x153   : > { %s782_s18 = sshra.s32 %s492_s10, 4  ;;  %s788_s12 = scalar_lea.hbm %s1032_s6, 4  ;;  %s783_s18 = int_to_ptr.hbm [resolvable:$true] %s782_s18 }
 0x154   : > { %s784_s21 = scalar_lea.hbm %s783_s18, 1  ;;  %p789_p2 = scmp.lt.s32.totalorder %s783_s18, %s1032_s6 }
 0x155   : > { %p785_p13 = scmp.ne.s32.totalorder %s783_s18, %s784_s21  ;;  %p790_p3 = scmp.lt.s32.totalorder %s788_s12, %s784_s21 }
 0x157   : > { %p786_p0 = pnand %p785_p13, %p916_p5  ;;  %p791_p4 = por %p790_p3, %p789_p2 }
 0x159   : > { %p787_p1 = pneg %p786_p0 }
 0x15b   : > { %p792_p7 = pnand %p791_p4, %p787_p1 }
 0x15d   : > { %795 = shalt.err (!%p792_p7)
}
 0x15e   : > { %663 = dma.vmem_to_hbm [thread:$0]  (%p916_p5), %s490_s30, 16, %s492_s10, %s445_s0  }
 0x15f PF: > { %p677_p8 = scmp.ge.s32.totalorder %s834_s26, 2  ;;  %s503_s14 = sand.u32 1, %s822_s23  }
 0x160   : > { %s504_s15 = scalar_lea.sflag [#allocation4], %s503_s14 }
 0x161   : > { %p668_p9 = pnand %p677_p8, %p920_p6 }
 0x163   : > { %p669_p10 = pneg %p668_p9 }
 0x165   : > { %813 = dma.done.wait (%p669_p10), %s504_s15, 256  }
 0x166   : > { %815 = vsyncadd (%p669_p10), %s504_s15, 4294967040  ;;  %s513_s8 = sand.u32 1, %s616_s27  }
 0x167   : > { %s514_s16 = scalar_lea.sflag [#allocation6], %s513_s8 }
 0x168   : > { %817 = dma.done.wait (%p669_p10), %s514_s16, 32  }
 0x169   : > { %819 = vsyncadd (%p669_p10), %s514_s16, 4294967264  ;;  %p21_p5 = scmp.ge.s32.totalorder %s901_s28, 6   ;;  %s1035_s23 = smov %s826_s24 }
 0x16a   : > { %s1036_s24 = smov %s830_s25  ;;  %s1037_s25 = smov %s914_s7 }
 0x16b   : > { %s1038_s26 = smov %s901_s28  ;;  %23 = sbr.rel (!%p21_p5) target bundleno = 7 (0x7), region = 106 }
 0x170   :  { %528 = vsyncpa [#allocation4], 1 }
 0x171   :  { %530 = vsyncpa [#allocation4 + $0x1], 1 }
 0x172   :  { %531 = vsyncpa [#allocation6], 1 }
 0x173   :  { %533 = vsyncpa [#allocation6 + $0x1], 1 }

</bundles_post_ra>
